<compile_context>
chip_gen: v7x
topology: tpu7x:2x2x1
jax: 0.10.0
libtpu: 0.0.40
codegen_flags: <defaults>
</compile_context>

<pallas_src>
import jax
import jax.numpy as jnp
from jax import lax
from jax.experimental import pallas as pl
from jax.experimental.pallas import tpu as pltpu

_LANE = 128


def _reference_loss(pred, gt):
    """Pure-JAX reference (identical math to the torch module)."""
    s = pred.astype(jnp.float32)
    x = gt.astype(jnp.float32)
    log_s = jnp.maximum(jnp.log(s), -100.0)
    log_1ms = jnp.maximum(jnp.log(1.0 - s), -100.0)
    bce = -(x * log_s + (1.0 - x) * log_1ms)
    return jnp.sum(bce) / jnp.float32(pred.shape[0])


def _make_perm_loss_kernel(*, block_rows, chunk_rows, feat, batch,
                           needs_mask, binary_gt):
    """Builds the kernel for one (block_rows, feat) block of the (B, N1*N2) view."""
    n_full = block_rows // chunk_rows       # full row-chunks per block (static)
    rem = block_rows % chunk_rows           # leftover rows (static)

    def kernel(pred_ref, gt_ref, out_ref):
        # Global row index of this block's first row (used only for masking).
        row_origin = pl.program_id(0) * block_rows

        def chunk_bce(r0, nrows):
            s = pred_ref[pl.ds(r0, nrows), :].astype(jnp.float32)
            x = gt_ref[pl.ds(r0, nrows), :].astype(jnp.float32)
            if binary_gt:
                # gt strictly {0,1}: single log -> half the EUP work.
                t = jnp.where(x != 0.0, s, 1.0 - s)
                bce = -jnp.maximum(jnp.log(t), -100.0)
            else:
                # General path == F.binary_cross_entropy (log terms clamped at -100).
                log_s = jnp.maximum(jnp.log(s), -100.0)
                log_1ms = jnp.maximum(jnp.log(1.0 - s), -100.0)
                bce = -(x * log_s + (1.0 - x) * log_1ms)
            if needs_mask:
                # Ragged last block: rows >= batch hold garbage -> zero them.
                rows = lax.broadcasted_iota(jnp.int32, (nrows, 1), 0)
                valid = (row_origin + r0 + rows) < batch
                bce = jnp.where(valid, bce, 0.0)
            return bce                                    # (nrows, feat) f32

        total = jnp.zeros((1, 1), jnp.float32)

        if n_full > 0:
            def body(c, acc):
                r0 = pl.multiple_of(c * chunk_rows, chunk_rows)
                bce = chunk_bce(r0, chunk_rows)
                # Fold the chunk's 8-row sublane groups: pure VPU adds.
                return acc + jnp.sum(
                    bce.reshape(chunk_rows // 8, 8, feat), axis=0)

            acc = lax.fori_loop(0, n_full, body,
                                jnp.zeros((8, feat), jnp.float32),
                                unroll=min(n_full, 4))
            col = jnp.sum(acc, axis=1, keepdims=True)      # (8, 1) XLU, once/step
            total = total + jnp.sum(col, axis=0, keepdims=True)

        if rem > 0:
            # Static leftover rows (only happens when a single block covers
            # the whole batch, so no masking is ever needed here).
            bce = chunk_bce(n_full * chunk_rows, rem)      # (rem, feat)
            col = jnp.sum(bce, axis=1, keepdims=True)      # (rem, 1)
            total = total + jnp.sum(col, axis=0, keepdims=True)

        out_ref[0] = total                                  # (1, 1)

    return kernel


def permutation_loss(pred_dsmat: jax.Array, gt_perm: jax.Array, *,
                     assume_binary_gt: bool = False,
                     small_input_threshold: int = 65536,
                     target_block_bytes: int = 4 * 1024 * 1024) -> jax.Array:
    """pred_dsmat, gt_perm: (B, N1, N2). Returns scalar f32 loss (BCE sum / B)."""
    assert pred_dsmat.shape == gt_perm.shape and pred_dsmat.ndim == 3
    B, N1, N2 = pred_dsmat.shape
    M = N1 * N2
    total_elems = B * M

    # Tiny problems: the fixed pallas_call cost dominates -> fused XLA path.
    if total_elems <= small_input_threshold:
        return _reference_loss(pred_dsmat, gt_perm)

    # Free (contiguous) reshape to a lane-dense (B, N1*N2) view. No padding copy.
    pred2d = pred_dsmat.reshape(B, M)
    gt2d = gt_perm.reshape(B, M)

    itemsize_min = min(pred2d.dtype.itemsize, gt2d.dtype.itemsize)
    itemsize_max = max(pred2d.dtype.itemsize, gt2d.dtype.itemsize)
    # Sublane packing multiple for the narrowest dtype: 8 (f32) / 16 (bf16) / 32 (i8).
    sub = max(8, 32 // max(1, itemsize_min))

    vregs_per_row = pl.cdiv(M, _LANE)
    lanes_pad = vregs_per_row * _LANE

    # Rows processed per inner-loop iteration: ~16 vregs of f32 per
    # intermediate keeps the live set inside the 64-vreg file (no spills).
    chunk_rows = 8 * max(1, 16 // vregs_per_row)
    chunk_rows = max(chunk_rows, sub)

    # Rows per grid block: ~target_block_bytes of input per stream per step.
    rows_target = max(chunk_rows,
                      target_block_bytes // (lanes_pad * itemsize_max))
    if B <= rows_target:
        tile_b = B                       # one block == full batch dim (always legal)
    else:
        tile_b = max(chunk_rows, (rows_target // chunk_rows) * chunk_rows)

    num_tiles = pl.cdiv(B, tile_b)
    needs_mask = (B % tile_b) != 0       # ragged last block -> mask in-kernel

    kernel = _make_perm_loss_kernel(
        block_rows=tile_b, chunk_rows=chunk_rows, feat=M, batch=B,
        needs_mask=needs_mask, binary_gt=assume_binary_gt)

    block_bytes = tile_b * lanes_pad * itemsize_max
    # 2 inputs x 2 pipeline buffers + headroom; floor at 32 MiB (raises v5e's
    # 16 MiB default), cap at 64 MiB (v7x physical per-TC VMEM).
    vmem_limit = int(min(64 * 1024 * 1024,
                         max(32 * 1024 * 1024, 5 * block_bytes)))

    cost = pl.CostEstimate(
        flops=8 * total_elems,
        transcendentals=(1 if assume_binary_gt else 2) * total_elems,
        bytes_accessed=int(pred2d.size * pred2d.dtype.itemsize
                           + gt2d.size * gt2d.dtype.itemsize
                           + num_tiles * 4),
    )

    partials = pl.pallas_call(
        kernel,
        out_shape=jax.ShapeDtypeStruct((num_tiles, 1, 1), jnp.float32),
        grid_spec=pltpu.PrefetchScalarGridSpec(
            num_scalar_prefetch=0,
            grid=(num_tiles,),
            in_specs=[
                pl.BlockSpec((tile_b, M), lambda i: (i, 0)),
                pl.BlockSpec((tile_b, M), lambda i: (i, 0)),
            ],
            out_specs=pl.BlockSpec((1, 1, 1), lambda i: (i, 0, 0)),
        ),
        compiler_params=pltpu.CompilerParams(
            dimension_semantics=("parallel",),
            vmem_limit_bytes=vmem_limit,
        ),
        cost_estimate=cost,
    )(pred2d, gt2d)

    # Final tiny reduction + divide-by-B (n_sum == batch_num) in the wrapper.
    return jnp.sum(partials) / jnp.float32(B)


def _make_demo_inputs(key, B, N1, N2):
    k_pred, k_gt = jax.random.split(key)
    logits = jax.random.normal(k_pred, (B, N1, N2), dtype=jnp.float32)
    pred = jax.nn.softmax(logits, axis=-1)              # strictly in (0, 1)
    idx = jax.random.randint(k_gt, (B, N1), 0, N2)
    gt = jax.nn.one_hot(idx, N2, dtype=jnp.float32)     # one-hot rows in {0, 1}
    return pred, gt


if __name__ == "__main__":
    key = jax.random.PRNGKey(0)

    # --- Small demo shape (B=2, N1=N2=16), force the Pallas kernel path. ---
    B, N1, N2 = 2, 16, 16
    k_pred, k_perm = jax.random.split(key)
    logits = jax.random.normal(k_pred, (B, N1, N2), dtype=jnp.float32)
    pred_dsmat = jax.nn.softmax(logits, axis=-1)
    gt_rows = []
    for b in range(B):
        perm = jax.random.permutation(jax.random.fold_in(k_perm, b), N2)[:N1]
        gt_rows.append(jax.nn.one_hot(perm, N2, dtype=jnp.float32))
    gt_perm = jnp.stack(gt_rows, axis=0)

    loss = permutation_loss(pred_dsmat, gt_perm, small_input_threshold=0)
    loss = jax.block_until_ready(loss)
    ref = _reference_loss(pred_dsmat, gt_perm)
    assert jnp.allclose(loss, ref, rtol=1e-5, atol=1e-5), (loss, ref)

    # --- Medium shape: exercises the chunked fori_loop + static remainder. ---
    pred_m, gt_m = _make_demo_inputs(jax.random.fold_in(key, 1), 300, 16, 16)
    loss_m = jax.block_until_ready(permutation_loss(pred_m, gt_m))
    ref_m = _reference_loss(pred_m, gt_m)
    assert jnp.allclose(loss_m, ref_m, rtol=1e-4, atol=1e-4), (loss_m, ref_m)

    # --- Same data with small blocks: exercises multi-tile grid + ragged-tail
    #     in-kernel masking (replaces the old host-side padding copy). ---
    loss_t = jax.block_until_ready(
        permutation_loss(pred_m, gt_m, target_block_bytes=64 * 1024))
    assert jnp.allclose(loss_t, ref_m, rtol=1e-4, atol=1e-4), (loss_t, ref_m)

    print("KERNEL_OK")
</pallas_src>

<mosaic_0001>
module attributes {stable_mosaic.version = 11 : i64} {
  func.func @kernel(%arg0: i32, %arg1: memref<2x256xf32, #tpu.memory_space<vmem>>, %arg2: memref<2x256xf32, #tpu.memory_space<vmem>>, %arg3: memref<1x1x1xf32, #tpu.memory_space<vmem>>) attributes {dimension_semantics = [#tpu.dimension_semantics<parallel>], iteration_bounds = array<i64: 1>, scalar_prefetch = 0 : i64, scratch_operands = 0 : i64, tpu.core_type = #tpu.core_type<tc>, window_params = [{transform_indices = @transform_0, window_bounds = array<i64: 2, 256>}, {transform_indices = @transform_1, window_bounds = array<i64: 2, 256>}, {transform_indices = @transform_2, window_bounds = array<i64: 1, 1, 1>}]} {
    %cst = arith.constant 0.000000e+00 : f32
    %0 = vector.broadcast %cst : f32 to vector<1x1xf32>
    %c0 = arith.constant 0 : index
    %c0_0 = arith.constant 0 : index
    %1 = vector.load %arg1[%c0, %c0_0] : memref<2x256xf32, #tpu.memory_space<vmem>>, vector<2x256xf32>
    %c0_1 = arith.constant 0 : index
    %c0_2 = arith.constant 0 : index
    %2 = vector.load %arg2[%c0_1, %c0_2] : memref<2x256xf32, #tpu.memory_space<vmem>>, vector<2x256xf32>
    %3 = math.log %1 : vector<2x256xf32>
    %cst_3 = arith.constant -1.000000e+02 : f32
    %4 = vector.broadcast %cst_3 : f32 to vector<2x256xf32>
    %5 = arith.maximumf %3, %4 : vector<2x256xf32>
    %cst_4 = arith.constant 1.000000e+00 : f32
    %6 = vector.broadcast %cst_4 : f32 to vector<2x256xf32>
    %7 = arith.subf %6, %1 : vector<2x256xf32>
    %8 = math.log %7 : vector<2x256xf32>
    %cst_5 = arith.constant -1.000000e+02 : f32
    %9 = vector.broadcast %cst_5 : f32 to vector<2x256xf32>
    %10 = arith.maximumf %8, %9 : vector<2x256xf32>
    %11 = arith.mulf %2, %5 : vector<2x256xf32>
    %cst_6 = arith.constant 1.000000e+00 : f32
    %12 = vector.broadcast %cst_6 : f32 to vector<2x256xf32>
    %13 = arith.subf %12, %2 : vector<2x256xf32>
    %14 = arith.mulf %13, %10 : vector<2x256xf32>
    %15 = arith.addf %11, %14 : vector<2x256xf32>
    %cst_7 = arith.constant 0.000000e+00 : f32
    %16 = vector.broadcast %cst_7 : f32 to vector<2x256xf32>
    %17 = arith.subf %16, %15 : vector<2x256xf32>
    %cst_8 = arith.constant dense<0.000000e+00> : vector<2xf32>
    %18 = vector.multi_reduction <add>, %17, %cst_8 [1] : vector<2x256xf32> to vector<2xf32>
    %19 = vector.shape_cast %18 : vector<2xf32> to vector<2x1xf32>
    %cst_9 = arith.constant dense<0.000000e+00> : vector<1xf32>
    %20 = vector.multi_reduction <add>, %19, %cst_9 [0] : vector<2x1xf32> to vector<1xf32>
    %21 = vector.shape_cast %20 : vector<1xf32> to vector<1x1xf32>
    %22 = arith.addf %0, %21 : vector<1x1xf32>
    %c0_10 = arith.constant 0 : index
    %c0_11 = arith.constant 0 : index
    %c0_12 = arith.constant 0 : index
    %23 = vector.load %arg3[%c0_10, %c0_11, %c0_12] : memref<1x1x1xf32, #tpu.memory_space<vmem>>, vector<1x1x1xf32>
    %24 = vector.shape_cast %23 : vector<1x1x1xf32> to vector<1x1xf32>
    %25 = vector.shape_cast %22 : vector<1x1xf32> to vector<1x1x1xf32>
    tpu.vector_store %arg3[%c0_10, %c0_11, %c0_12], %25 {strides = array<i32>} : memref<1x1x1xf32, #tpu.memory_space<vmem>>, vector<1x1x1xf32>,
    return
  }
  func.func @transform_0(%arg0: i32) -> (i32, i32) {
    %c0_i32 = arith.constant 0 : i32
    %c0_i32_0 = arith.constant 0 : i32
    return %arg0, %c0_i32 : i32, i32
  }
  func.func @transform_1(%arg0: i32) -> (i32, i32) {
    %c0_i32 = arith.constant 0 : i32
    %c0_i32_0 = arith.constant 0 : i32
    return %arg0, %c0_i32 : i32, i32
  }
  func.func @transform_2(%arg0: i32) -> (i32, i32, i32) {
    %c0_i32 = arith.constant 0 : i32
    %c0_i32_0 = arith.constant 0 : i32
    %c0_i32_1 = arith.constant 0 : i32
    return %arg0, %c0_i32, %c0_i32_0 : i32, i32, i32
  }
}

</mosaic_0001>

<bundles_post_ra>
// kernel: tpu_custom_call.1
= control target key start
LH: loop header
LB: loop body
LE: loop exit
PB: predicated region body
PF: predicated region fallthrough
CT: control target
= control target key end

     0   :  { %7 = vsyncpa [#allocation3], 0  ;;  %s228_s0 = inlined_call_operand.hbm [shape: f32[2,256], index: 0, kind: input, shape index: {}]   ;;  %s229_s1 = inlined_call_operand.hbm [shape: f32[2,256], index: 1, kind: input, shape index: {}]   ;;  %s230_s2 = inlined_call_operand.hbm [shape: f32[1,1,1], index: 2, kind: output, shape index: {}]  }
   0x1   :  { %8 = vsyncpa [#allocation6], 0 }
   0x2   :  { %9 = vsyncpa [#allocation4], 0  ;;  %s173_s9 = smov [#allocation2]   ;;  %s174_s11 = smov [#allocation5]  }
   0x3   :  { %s16_s10 = sshll.u32 %s173_s9, 4  ;;  %s26_s12 = sshll.u32 %s174_s11, 4  ;;  %s17_s10 = int_to_ptr.vmem [resolvable:$true] %s16_s10  ;;  %s27_s12 = int_to_ptr.vmem [resolvable:$true] %s26_s12 }
   0x4   :  { %s101_s15 = scalar_lea.hbm %s228_s0, 64 }
   0x5   :  { %p102_p0 = scmp.ne.s32.totalorder %s228_s0, %s101_s15  ;;  %p105_p1 = scmp.lt.u32.totalorder %s101_s15, %s228_s0 }
   0x7   :  { %p107_p2 = pnand %p105_p1, %p102_p0 }
   0x9   :  { %110 = shalt.err (!%p107_p2)
}
   0xa   :  { %s111_s20 = scalar_lea.vmem %s17_s10, 64  ;;  %p116_p4 = scmp.lt.s32.totalorder %s17_s10, %s17_s10 }
   0xb   :  { %p112_p3 = scmp.ne.s32.totalorder %s17_s10, %s111_s20  ;;  %p117_p5 = scmp.lt.s32.totalorder %s111_s20, %s111_s20 }
   0xd   :  { %p118_p6 = por %p117_p5, %p116_p4 }
   0xf   :  { %p119_p7 = pnand %p118_p6, %p112_p3 }
  0x11   :  { %122 = shalt.err (!%p119_p7)
}
  0x12   :  { %19 = dma.hbm_to_vmem [thread:$0]  %s228_s0, 64, %s17_s10, [#allocation3]  }
  0x13   :  { %s123_s25 = scalar_lea.hbm %s229_s1, 64 }
  0x14   :  { %p124_p8 = scmp.ne.s32.totalorder %s229_s1, %s123_s25  ;;  %p127_p9 = scmp.lt.u32.totalorder %s123_s25, %s229_s1 }
  0x16   :  { %p129_p10 = pnand %p127_p9, %p124_p8 }
  0x18   :  { %132 = shalt.err (!%p129_p10)
}
  0x19   :  { %s133_s30 = scalar_lea.vmem %s27_s12, 64  ;;  %p138_p12 = scmp.lt.s32.totalorder %s27_s12, %s27_s12 }
  0x1a   :  { %p134_p11 = scmp.ne.s32.totalorder %s27_s12, %s133_s30  ;;  %p139_p13 = scmp.lt.s32.totalorder %s133_s30, %s133_s30 }
  0x1c   :  { %p140_p0 = por %p139_p13, %p138_p12 }
  0x1e   :  { %p141_p1 = pnand %p140_p0, %p134_p11 }
  0x20   :  { %144 = shalt.err (!%p141_p1)
}
  0x21   :  { %29 = dma.hbm_to_vmem [thread:$0]  %s229_s1, 64, %s27_s12, [#allocation6]  }
  0x22   :  { %167 = dma.done.wait [#allocation3], 64  }
  0x23   :  { %168 = vsyncadd [#allocation3], 4294967232 }
  0x24   :  { %169 = dma.done.wait [#allocation6], 64  }
  0x25   :  { %170 = vsyncadd [#allocation6], 4294967232  ;;  %v36_v0 = vld [vmem:[#allocation2] sm:$0xf]  ;;  %v37_v3 = vld [vmem:[#allocation5] sm:$0xf]  ;;  %v54_v7 = vlaneseq }
  0x26   :  { %97 = vlog2.f32 %v36_v0  ;;  %v41_v1 = vsub.f32 1.0, %v36_v0  ;;  %v175_v5 = vmov 1983009808   ;;  %v46_v11 = vsub.f32 1.0, %v37_v3  ;;  %s176_s1 = smov [#allocation7]  }
  0x27   :  { %v52_v6 = vunpack.c.l.s4 %v175_v5  ;;  %v55_v15 = vshrl.u32 %v54_v7, 7  ;;  %vm61_vm0 = vcmask 1041408   ;;  %s83_s4 = sshll.u32 %s176_s1, 4  ;;  %vm75_vm1 = vcmask 0   ;;  %s84_s4 = int_to_ptr.vmem [resolvable:$true] %s83_s4 }
  0x28   :  { %99 = vlog2.f32 %v41_v1  ;;  %s145_s5 = scalar_lea.vmem %s84_s4, 16  ;;  %s149_s6 = scalar_lea.vmem %s84_s4, 32 }
  0x29   :  { %v53_v14 = vunpack.c.0.s8 %v52_v6  ;;  %p146_p2 = scmp.ne.s32.totalorder %s84_s4, %s145_s5  ;;  %p150_p3 = scmp.lt.s32.totalorder %s84_s4, %s84_s4 }
  0x2a   :  { %p151_p4 = scmp.lt.s32.totalorder %s149_s6, %s145_s5 }
  0x2b   :  { %v56_v18 = vsub.s32 %v53_v14, %v55_v15 }
  0x2c   :  { %p152_p5 = por %p151_p4, %p150_p3 }
  0x2e   :  { %p153_p6 = pnand %p152_p5, %p146_p2 }
  0x30   :  { %v98_v2 = vpop.eup %97 }
  0x31   :  { %v39_v4 = vmul.f32 0.6931472, %v98_v2 }
  0x32   :  { %v100_v8 = vpop.eup %99 }
  0x33   :  { %v40_v9 = vmax.f32 %v39_v4, -100.0  ;;  %v43_v10 = vmul.f32 0.6931472, %v100_v8 }
  0x35   :  { %v44_v12 = vmax.f32 %v43_v10, -100.0  ;;  %v45_v13 = vmul.f32 %v40_v9, %v37_v3 }
  0x37   :  { %v47_v16 = vmul.f32 %v46_v11, %v44_v12 }
  0x39   :  { %v48_v17 = vadd.f32 %v47_v16, %v45_v13 }
  0x3b   :  { %v49_v19 = vsub.f32 0.0, %v48_v17 }
  0x3d   :  { %v57_v20 = vrot.slane %v49_v19, %v56_v18 }
  0x3f   :  { %v58_v21 = vcombine.high %v57_v20, %v57_v20  ;;  %v62_v22 = vsel %vm61_vm0, %v57_v20, 0.0 }
  0x41   :  { %v63_v23 = vsel %vm61_vm0, %v58_v21, 0.0 }
  0x42   :  { %v64_v24 = vadd.f32 %v63_v23, %v62_v22 }
  0x44   :  { %65 = vadd.xlane.f32.xlu0 %v64_v24 }
  0xd1   :  { %v66_v25 = vpop.xlane.xlu0 %65 }
  0xd2   :  { %v67_v26 = vsel %vm61_vm0, %v66_v25, 0.0 }
  0xd3   :  { %v68_v27 = vrot.slane %v67_v26, 4 }
  0xd5   :  { %v69_v28 = vadd.f32 %v68_v27, %v67_v26 }
  0xd7   :  { %v70_v29 = vrot.slane %v69_v28, 2 }
  0xd9   :  { %v71_v30 = vadd.f32 %v70_v29, %v69_v28 }
  0xdb   :  { %v72_v31 = vrot.slane %v71_v30, 1 }
  0xdd   :  { %v73_v32 = vadd.f32 %v72_v31, %v71_v30 }
  0xdf   :  { %76 = vst.msk [vmem:[#allocation7] sm:$0x1] %vm75_vm1, %v73_v32 }
  0xe0   :  { %156 = shalt.err (!%p153_p6)
}
  0xe1   :  { %s157_s9 = scalar_lea.hbm %s230_s2, 16 }
  0xe2   :  { %p158_p7 = scmp.ne.s32.totalorder %s230_s2, %s157_s9  ;;  %p161_p8 = scmp.lt.u32.totalorder %s157_s9, %s230_s2 }
  0xe4   :  { %p163_p9 = pnand %p161_p8, %p158_p7 }
  0xe6   :  { %166 = shalt.err (!%p163_p9)
}
  0xe7   :  { %86 = dma.vmem_to_hbm [thread:$0]  %s84_s4, 16, %s230_s2, [#allocation4]  }
  0xe8   :  { %171 = dma.done.wait [#allocation4], 16  }
  0xe9   :  { %172 = vsyncadd [#allocation4], 4294967280 }
  0xea   :  { %90 = vsyncpa [#allocation3], 1 }
  0xeb   :  { %91 = vsyncpa [#allocation6], 1 }
  0xec   :  { %92 = vsyncpa [#allocation4], 1 }

</bundles_post_ra>
